<compile_context>
chip_gen: v6e
topology: v6e:2x2x1
jax: 0.10.0
libtpu: 0.0.40
codegen_flags: <defaults>
</compile_context>

<pallas_src>
import math

import jax
import jax.numpy as jnp
from jax.experimental import pallas as pl
from jax.experimental.pallas import tpu as pltpu


# --------------------------------------------------------------------------
# Pallas kernels
# --------------------------------------------------------------------------

def _mlm_logits_lse_kernel(x_ref, w_ref, b_ref, logits_ref, lse_ref,
                           m_ref, l_ref):
    """One (tm, tn) logits tile per grid step: full-K matmul + bias, plus an
    online log-sum-exp carried across the vocab (j) axis in VMEM scratch.

    grid = (M tiles, vocab tiles).  The j axis carries running row-max /
    row-sum-exp state, so it must stay sequential ("arbitrary").
    """
    j = pl.program_id(1)
    nj = pl.num_programs(1)

    # New row tile: reset the online-softmax state.
    @pl.when(j == 0)
    def _():
        m_ref[...] = jnp.full_like(m_ref, -jnp.inf)
        l_ref[...] = jnp.zeros_like(l_ref)

    # Full-K matmul with f32 MXU accumulation, then bias (f32).
    y = jnp.dot(x_ref[...], w_ref[...], preferred_element_type=jnp.float32)
    y = y + b_ref[...]                                   # (tm, tn) f32

    # Store the logits tile in the (possibly narrower) intermediate dtype and
    # run the LSE update on the *stored* values so the finalize pass
    # (logits - lse) normalizes exactly even with bf16 intermediates.
    y_store = y.astype(logits_ref.dtype)
    logits_ref[...] = y_store
    y32 = y_store.astype(jnp.float32)

    m_prev = m_ref[...]                                  # (tm, 1)
    m_new = jnp.maximum(m_prev, jnp.max(y32, axis=-1, keepdims=True))
    l_ref[...] = (l_ref[...] * jnp.exp(m_prev - m_new)
                  + jnp.sum(jnp.exp(y32 - m_new), axis=-1, keepdims=True))
    m_ref[...] = m_new

    # Last vocab tile: emit per-row log-sum-exp (the lse output block's index
    # map ignores j, so it only writes back to HBM after the full j sweep).
    @pl.when(j == nj - 1)
    def _():
        lse_ref[...] = m_ref[...] + jnp.log(l_ref[...])


def _log_softmax_finalize_kernel(logits_ref, lse_ref, o_ref):
    """o = logits - lse; pure HBM-bandwidth pass with big lane-dense tiles."""
    o_ref[...] = (logits_ref[...].astype(jnp.float32)
                  - lse_ref[...]).astype(o_ref.dtype)


# --------------------------------------------------------------------------
# Tiling helpers
# --------------------------------------------------------------------------

def _round_up(x, m):
    return ((x + m - 1) // m) * m


def _pick_tile(dim, target):
    """(tile, padded_dim).  If dim <= target, use the full dim as one block."""
    if dim <= target:
        return dim, dim
    return target, _round_up(dim, target)


def _largest_divisor_block(dim, target, step):
    """Largest power-of-two multiple of `step` (<= target) dividing dim,
    else the full dim (full-extent blocks are always layout-legal)."""
    c = target
    while c >= step:
        if dim % c == 0:
            return c
        c //= 2
    return dim


def _default_matmul_tiles():
    """Generation-aware (tm, tn) preset for bf16 operands.

    v5e/v6e (128 MiB VMEM): (1024, 2048) ~20 MiB incl. double buffers.
    v7x    (64 MiB VMEM):   (512, 1024)  ~9 MiB, keeps pipelining headroom.
    """
    vmem = 64 * 1024 * 1024
    try:
        vmem = getattr(pltpu.get_tpu_info(), "vmem_capacity_bytes", vmem)
    except Exception:
        pass
    if vmem >= 100 * 1024 * 1024:
        return 1024, 2048
    return 512, 1024


# --------------------------------------------------------------------------
# Wrapper
# --------------------------------------------------------------------------

def prepare_mlm_params(w, b, *, tn=None, compute_dtype=jnp.bfloat16):
    """Pad + cast the static (d_model, vocab) weight and (vocab,) bias ONCE.

    Padded vocab columns get a -1e30 bias so they contribute ~0 to the softmax
    normalizer; they are sliced off (or masked) by the caller.
    Returns (w_prepared, b_prepared, vocab_size, tn).
    """
    if tn is None:
        tn = _default_matmul_tiles()[1]
    d_model, V = w.shape
    tn, V_pad = _pick_tile(V, tn)
    wp, bp = w, b
    if V_pad != V:
        wp = jnp.pad(w, ((0, 0), (0, V_pad - V)))
        bp = jnp.pad(b, (0, V_pad - V), constant_values=-1e30)
    wp = wp.astype(compute_dtype)
    bp = bp.reshape(1, V_pad).astype(jnp.float32)
    return wp, bp, V, tn


def mlm_forward_prepared(x, wp, bp, vocab_size, tn, *,
                         tm=None,
                         logits_dtype=jnp.bfloat16,
                         out_dtype=jnp.float32,
                         finalize_block=(512, 2048),
                         vmem_limit_bytes=48 * 1024 * 1024):
    """log_softmax(x @ w + b, axis=-1) using pre-padded / pre-cast params."""
    *lead, d_model = x.shape
    K, V_pad = wp.shape
    assert K == d_model, "x feature dim must match prepared weight rows"
    M = math.prod(lead) if lead else 1
    x2 = x.reshape(M, d_model)

    if tm is None:
        tm = _default_matmul_tiles()[0]
    tm, M_pad = _pick_tile(M, tm)

    xp = x2
    if M_pad != M:
        xp = jnp.pad(x2, ((0, M_pad - M), (0, 0)))
    xp = xp.astype(wp.dtype)

    grid = (M_pad // tm, V_pad // tn)

    # Pass 1: matmul + bias + online LSE.  j (vocab) axis carries running
    # max/sum state in scratch -> MUST stay "arbitrary"; i is "parallel".
    logits, lse = pl.pallas_call(
        _mlm_logits_lse_kernel,
        out_shape=(jax.ShapeDtypeStruct((M_pad, V_pad), logits_dtype),
                   jax.ShapeDtypeStruct((M_pad, 1), jnp.float32)),
        grid=grid,
        in_specs=[
            pl.BlockSpec((tm, d_model), lambda i, j: (i, 0)),   # x (full K)
            pl.BlockSpec((d_model, tn), lambda i, j: (0, j)),   # w (full K)
            pl.BlockSpec((1, tn), lambda i, j: (0, j)),         # bias
        ],
        out_specs=(
            pl.BlockSpec((tm, tn), lambda i, j: (i, j)),        # logits
            pl.BlockSpec((tm, 1), lambda i, j: (i, 0)),         # lse
        ),
        scratch_shapes=[
            pltpu.VMEM((tm, 1), jnp.float32),   # running row max
            pltpu.VMEM((tm, 1), jnp.float32),   # running row sum-exp
        ],
        compiler_params=pltpu.CompilerParams(
            dimension_semantics=("parallel", "arbitrary"),
            vmem_limit_bytes=vmem_limit_bytes),
    )(xp, wp, bp)

    # Pass 2: finalize log-softmax with its own, larger lane-dense blocks.
    fm = _largest_divisor_block(M_pad, finalize_block[0], 8)
    fn = _largest_divisor_block(V_pad, finalize_block[1], 128)
    alias = {0: 0} if jnp.dtype(logits_dtype) == jnp.dtype(out_dtype) else {}

    out = pl.pallas_call(
        _log_softmax_finalize_kernel,
        out_shape=jax.ShapeDtypeStruct((M_pad, V_pad), out_dtype),
        grid=(M_pad // fm, V_pad // fn),
        in_specs=[
            pl.BlockSpec((fm, fn), lambda i, j: (i, j)),
            pl.BlockSpec((fm, 1), lambda i, j: (i, 0)),
        ],
        out_specs=pl.BlockSpec((fm, fn), lambda i, j: (i, j)),
        input_output_aliases=alias,   # in-place when dtypes match
        compiler_params=pltpu.CompilerParams(
            dimension_semantics=("parallel", "parallel"),
            vmem_limit_bytes=vmem_limit_bytes),
    )(logits, lse)

    if M_pad != M or V_pad != vocab_size:
        out = out[:M, :vocab_size]
    return out.reshape(*lead, vocab_size)


def mlm_forward(x, w, b, *,
                compute_dtype=jnp.bfloat16,
                logits_dtype=jnp.bfloat16,
                out_dtype=jnp.float32,
                tm=None, tn=None,
                finalize_block=(512, 2048),
                vmem_limit_bytes=48 * 1024 * 1024):
    """Convenience wrapper: prepares (pads/casts) params then runs forward.

    For repeated calls with static weights, call prepare_mlm_params() once and
    reuse mlm_forward_prepared() to avoid re-padding/casting the full weight.
    """
    if tm is None or tn is None:
        dm, dn = _default_matmul_tiles()
        tm = dm if tm is None else tm
        tn = dn if tn is None else tn
    wp, bp, V, tn = prepare_mlm_params(w, b, tn=tn, compute_dtype=compute_dtype)
    return mlm_forward_prepared(
        x, wp, bp, V, tn, tm=tm, logits_dtype=logits_dtype,
        out_dtype=out_dtype, finalize_block=finalize_block,
        vmem_limit_bytes=vmem_limit_bytes)


# --------------------------------------------------------------------------
# Main
# --------------------------------------------------------------------------

if __name__ == "__main__":
    key = jax.random.PRNGKey(0)
    k_x, k_w, k_b, k_x2, k_w2, k_b2, k_x3 = jax.random.split(key, 7)

    # -- case 1: small aligned shapes, full-precision path (tight check) -----
    B, S, D_MODEL, VOCAB = 2, 8, 32, 512
    x = jax.random.normal(k_x, (B, S, D_MODEL), jnp.float32)
    # nn.Linear(d_model, vocab) stored directly as (d_model, vocab) = weight.T
    w = jax.random.normal(k_w, (D_MODEL, VOCAB), jnp.float32) * 0.05
    b = jax.random.normal(k_b, (VOCAB,), jnp.float32) * 0.05
    ref = jax.nn.log_softmax(x @ w + b, axis=-1)

    out1 = mlm_forward(x, w, b, compute_dtype=jnp.float32,
                       logits_dtype=jnp.float32)
    jax.block_until_ready(out1)
    assert out1.shape == (B, S, VOCAB)
    assert jnp.allclose(jnp.exp(out1).sum(-1), 1.0, atol=1e-4)
    assert jnp.allclose(out1, ref, atol=2e-3, rtol=2e-3)

    # -- case 2: default fast path (bf16 operands + bf16 intermediate logits) -
    out2 = mlm_forward(x, w, b)
    jax.block_until_ready(out2)
    assert out2.dtype == jnp.float32
    assert jnp.allclose(jnp.exp(out2).sum(-1), 1.0, atol=1e-3)
    assert jnp.allclose(out2, ref, atol=3e-2, rtol=3e-2)

    # -- case 3: unaligned vocab, forced multi-tile grid (online LSE + pad) ---
    M2, D2, V2 = 24, 48, 200
    x2 = jax.random.normal(k_x2, (M2, D2), jnp.float32)
    w2 = jax.random.normal(k_w2, (D2, V2), jnp.float32) * 0.05
    b2 = jax.random.normal(k_b2, (V2,), jnp.float32) * 0.05
    out3 = mlm_forward(x2, w2, b2, compute_dtype=jnp.float32,
                       logits_dtype=jnp.float32, tm=8, tn=128)
    jax.block_until_ready(out3)
    ref3 = jax.nn.log_softmax(x2 @ w2 + b2, axis=-1)
    assert out3.shape == (M2, V2)
    assert jnp.allclose(jnp.exp(out3).sum(-1), 1.0, atol=1e-4)
    assert jnp.allclose(out3, ref3, atol=2e-3, rtol=2e-3)

    # -- case 4: prepare weights ONCE, reuse across calls (bf16 fast path) ----
    wp, bp, V, tn = prepare_mlm_params(w, b)
    outa = mlm_forward_prepared(x, wp, bp, V, tn)
    x3 = jax.random.normal(k_x3, (B, S, D_MODEL), jnp.float32)
    outb = mlm_forward_prepared(x3, wp, bp, V, tn)
    jax.block_until_ready((outa, outb))
    assert outa.shape == (B, S, VOCAB) and outb.shape == (B, S, VOCAB)
    assert jnp.allclose(jnp.exp(outa).sum(-1), 1.0, atol=1e-3)
    assert jnp.allclose(jnp.exp(outb).sum(-1), 1.0, atol=1e-3)
    assert jnp.allclose(outa, ref, atol=3e-2, rtol=3e-2)

    print("KERNEL_OK")
</pallas_src>

<mosaic_0001>
module attributes {stable_mosaic.version = 11 : i64} {
  func.func @_mlm_logits_lse_kernel(%arg0: i32, %arg1: i32, %arg2: memref<16x32xf32, #tpu.memory_space<vmem>>, %arg3: memref<32x512xf32, #tpu.memory_space<vmem>>, %arg4: memref<1x512xf32, #tpu.memory_space<vmem>>, %arg5: memref<16x512xf32, #tpu.memory_space<vmem>>, %arg6: memref<16x1xf32, #tpu.memory_space<vmem>>, %arg7: memref<16x1xf32, #tpu.memory_space<vmem>>, %arg8: memref<16x1xf32, #tpu.memory_space<vmem>>) attributes {dimension_semantics = [#tpu.dimension_semantics<parallel>, #tpu.dimension_semantics<arbitrary>], iteration_bounds = array<i64: 1, 1>, scalar_prefetch = 0 : i64, scratch_operands = 2 : i64, tpu.core_type = #tpu.core_type<tc>, window_params = [{transform_indices = @transform_0, window_bounds = array<i64: 16, 32>}, {transform_indices = @transform_1, window_bounds = array<i64: 32, 512>}, {transform_indices = @transform_2, window_bounds = array<i64: 1, 512>}, {transform_indices = @transform_3, window_bounds = array<i64: 16, 512>}, {transform_indices = @transform_4, window_bounds = array<i64: 16, 1>}]} {
    %c0_i32 = arith.constant 0 : i32
    %0 = arith.cmpi eq, %arg1, %c0_i32 : i32
    %1 = arith.extui %0 : i1 to i32
    %c0_i32_0 = arith.constant 0 : i32
    %2 = arith.cmpi ne, %1, %c0_i32_0 : i32
    scf.if %2 {
      %cst_20 = arith.constant 0xFF800000 : f32
      %29 = vector.broadcast %cst_20 : f32 to vector<16x1xf32>
      %c0_21 = arith.constant 0 : index
      %c0_22 = arith.constant 0 : index
      %30 = vector.load %arg7[%c0_21, %c0_22] : memref<16x1xf32, #tpu.memory_space<vmem>>, vector<16x1xf32>
      tpu.vector_store %arg7[%c0_21, %c0_22], %29 {strides = array<i32>} : memref<16x1xf32, #tpu.memory_space<vmem>>, vector<16x1xf32>,
      %cst_23 = arith.constant 0.000000e+00 : f32
      %31 = vector.broadcast %cst_23 : f32 to vector<16x1xf32>
      %c0_24 = arith.constant 0 : index
      %c0_25 = arith.constant 0 : index
      %32 = vector.load %arg8[%c0_24, %c0_25] : memref<16x1xf32, #tpu.memory_space<vmem>>, vector<16x1xf32>
      tpu.vector_store %arg8[%c0_24, %c0_25], %31 {strides = array<i32>} : memref<16x1xf32, #tpu.memory_space<vmem>>, vector<16x1xf32>,
    } else {
    }
    %c0 = arith.constant 0 : index
    %c0_1 = arith.constant 0 : index
    %3 = vector.load %arg2[%c0, %c0_1] : memref<16x32xf32, #tpu.memory_space<vmem>>, vector<16x32xf32>
    %c0_2 = arith.constant 0 : index
    %c0_3 = arith.constant 0 : index
    %4 = vector.load %arg3[%c0_2, %c0_3] : memref<32x512xf32, #tpu.memory_space<vmem>>, vector<32x512xf32>
    %cst = arith.constant dense<0.000000e+00> : vector<16x512xf32>
    %5 = tpu.matmul %3, %4, %cst {dimension_numbers = #tpu.dot_dimension_numbers<[1], [0], [0], [1], [0, 0, 1, 1], [], []>} : vector<16x32xf32>, vector<32x512xf32>, vector<16x512xf32> -> vector<16x512xf32>
    %c0_4 = arith.constant 0 : index
    %c0_5 = arith.constant 0 : index
    %6 = vector.load %arg4[%c0_4, %c0_5] : memref<1x512xf32, #tpu.memory_space<vmem>>, vector<1x512xf32>
    %7 = vector.broadcast %6 : vector<1x512xf32> to vector<16x512xf32>
    %8 = arith.addf %5, %7 : vector<16x512xf32>
    %c0_6 = arith.constant 0 : index
    %c0_7 = arith.constant 0 : index
    %9 = vector.load %arg5[%c0_6, %c0_7] : memref<16x512xf32, #tpu.memory_space<vmem>>, vector<16x512xf32>
    tpu.vector_store %arg5[%c0_6, %c0_7], %8 {strides = array<i32>} : memref<16x512xf32, #tpu.memory_space<vmem>>, vector<16x512xf32>,
    %c0_8 = arith.constant 0 : index
    %c0_9 = arith.constant 0 : index
    %10 = vector.load %arg7[%c0_8, %c0_9] : memref<16x1xf32, #tpu.memory_space<vmem>>, vector<16x1xf32>
    %cst_10 = arith.constant dense<0xFF800000> : vector<16xf32>
    %11 = vector.multi_reduction <maximumf>, %8, %cst_10 [1] : vector<16x512xf32> to vector<16xf32>
    %12 = vector.shape_cast %11 : vector<16xf32> to vector<16x1xf32>
    %13 = arith.maximumf %10, %12 : vector<16x1xf32>
    %c0_11 = arith.constant 0 : index
    %c0_12 = arith.constant 0 : index
    %14 = vector.load %arg8[%c0_11, %c0_12] : memref<16x1xf32, #tpu.memory_space<vmem>>, vector<16x1xf32>
    %15 = arith.subf %10, %13 : vector<16x1xf32>
    %16 = math.exp %15 : vector<16x1xf32>
    %17 = arith.mulf %14, %16 : vector<16x1xf32>
    %18 = vector.broadcast %13 : vector<16x1xf32> to vector<16x512xf32>
    %19 = arith.subf %8, %18 : vector<16x512xf32>
    %20 = math.exp %19 : vector<16x512xf32>
    %cst_13 = arith.constant dense<0.000000e+00> : vector<16xf32>
    %21 = vector.multi_reduction <add>, %20, %cst_13 [1] : vector<16x512xf32> to vector<16xf32>
    %22 = vector.shape_cast %21 : vector<16xf32> to vector<16x1xf32>
    %23 = arith.addf %17, %22 : vector<16x1xf32>
    %c0_14 = arith.constant 0 : index
    %c0_15 = arith.constant 0 : index
    %24 = vector.load %arg8[%c0_14, %c0_15] : memref<16x1xf32, #tpu.memory_space<vmem>>, vector<16x1xf32>
    tpu.vector_store %arg8[%c0_14, %c0_15], %23 {strides = array<i32>} : memref<16x1xf32, #tpu.memory_space<vmem>>, vector<16x1xf32>,
    %c0_16 = arith.constant 0 : index
    %c0_17 = arith.constant 0 : index
    %25 = vector.load %arg7[%c0_16, %c0_17] : memref<16x1xf32, #tpu.memory_space<vmem>>, vector<16x1xf32>
    tpu.vector_store %arg7[%c0_16, %c0_17], %13 {strides = array<i32>} : memref<16x1xf32, #tpu.memory_space<vmem>>, vector<16x1xf32>,
    %c0_i32_18 = arith.constant 0 : i32
    %26 = arith.cmpi eq, %arg1, %c0_i32_18 : i32
    %27 = arith.extui %26 : i1 to i32
    %c0_i32_19 = arith.constant 0 : i32
    %28 = arith.cmpi ne, %27, %c0_i32_19 : i32
    scf.if %28 {
      %c0_20 = arith.constant 0 : index
      %c0_21 = arith.constant 0 : index
      %29 = vector.load %arg7[%c0_20, %c0_21] : memref<16x1xf32, #tpu.memory_space<vmem>>, vector<16x1xf32>
      %c0_22 = arith.constant 0 : index
      %c0_23 = arith.constant 0 : index
      %30 = vector.load %arg8[%c0_22, %c0_23] : memref<16x1xf32, #tpu.memory_space<vmem>>, vector<16x1xf32>
      %31 = math.log %30 : vector<16x1xf32>
      %32 = arith.addf %29, %31 : vector<16x1xf32>
      %c0_24 = arith.constant 0 : index
      %c0_25 = arith.constant 0 : index
      %33 = vector.load %arg6[%c0_24, %c0_25] : memref<16x1xf32, #tpu.memory_space<vmem>>, vector<16x1xf32>
      tpu.vector_store %arg6[%c0_24, %c0_25], %32 {strides = array<i32>} : memref<16x1xf32, #tpu.memory_space<vmem>>, vector<16x1xf32>,
    } else {
    }
    return
  }
  func.func @transform_0(%arg0: i32, %arg1: i32) -> (i32, i32) {
    %c0_i32 = arith.constant 0 : i32
    %c0_i32_0 = arith.constant 0 : i32
    return %arg0, %c0_i32 : i32, i32
  }
  func.func @transform_1(%arg0: i32, %arg1: i32) -> (i32, i32) {
    %c0_i32 = arith.constant 0 : i32
    %c0_i32_0 = arith.constant 0 : i32
    return %c0_i32, %arg1 : i32, i32
  }
  func.func @transform_2(%arg0: i32, %arg1: i32) -> (i32, i32) {
    %c0_i32 = arith.constant 0 : i32
    %c0_i32_0 = arith.constant 0 : i32
    return %c0_i32, %arg1 : i32, i32
  }
  func.func @transform_3(%arg0: i32, %arg1: i32) -> (i32, i32) {
    %c0_i32 = arith.constant 0 : i32
    return %arg0, %arg1 : i32, i32
  }
  func.func @transform_4(%arg0: i32, %arg1: i32) -> (i32, i32) {
    %c0_i32 = arith.constant 0 : i32
    %c0_i32_0 = arith.constant 0 : i32
    return %arg0, %c0_i32 : i32, i32
  }
}

</mosaic_0001>

<bundles_post_ra>
// kernel: tpu_custom_call.1
= control target key start
LH: loop header
LB: loop body
LE: loop exit
PB: predicated region body
PF: predicated region fallthrough
CT: control target
= control target key end

     0   :  { %10 = vsyncpa [#allocation5], 0  ;;  %s596_s0 = inlined_call_operand.hbm [shape: f32[16,32], index: 0, kind: input, shape index: {}]   ;;  %s597_s1 = inlined_call_operand.hbm [shape: f32[32,512], index: 1, kind: input, shape index: {}]   ;;  %s598_s2 = inlined_call_operand.hbm [shape: f32[1,512], index: 2, kind: input, shape index: {}]   ;;  %s599_s3 = inlined_call_operand.hbm [shape: f32[16,512], index: 3, kind: output, shape index: {0}]   ;;  %s600_s4 = inlined_call_operand.vmem [shape: f32[16,1], index: 4, kind: output, shape index: {1}]  }
   0x1   :  { %11 = vsyncpa [#allocation8], 0 }
   0x2   :  { %12 = vsyncpa [#allocation6], 0  ;;  %s513_s15 = smov [#allocation7]  }
   0x3   :  { %s30_s16 = sshll.u32 %s513_s15, 4  ;;  %s31_s16 = int_to_ptr.vmem [resolvable:$true] %s30_s16 }
   0x4   :  { %s435_s17 = scalar_lea.vmem %s31_s16, 2048  ;;  %p440_p1 = scmp.lt.s32.totalorder %s31_s16, %s31_s16 }
   0x5   :  { %p436_p0 = scmp.ne.s32.totalorder %s31_s16, %s435_s17  ;;  %p441_p2 = scmp.lt.s32.totalorder %s435_s17, %s435_s17 }
   0x7   :  { %p442_p3 = por %p441_p2, %p440_p1 }
   0x9   :  { %p443_p4 = pnand %p442_p3, %p436_p0 }
   0xb   :  { %446 = shalt.err (!%p443_p4)
}
   0xc   :  { %s514_s18 = smov 512   ;;  %s515_s19 = smov 32  }
   0xd   :  { %36 = dma.hbm_to_vmem [thread:$0]  %s597_s1, 2048, %s31_s16, [#allocation8], %s514_s18, %s514_s18, %s515_s19  }
   0xe   :  { %s516_s22 = smov [#allocation4]  }
   0xf   :  { %s18_s23 = sshll.u32 %s516_s22, 4  ;;  %s19_s23 = int_to_ptr.vmem [resolvable:$true] %s18_s23 }
  0x10   :  { %s455_s24 = scalar_lea.vmem %s19_s23, 256  ;;  %p460_p6 = scmp.lt.s32.totalorder %s19_s23, %s19_s23 }
  0x11   :  { %p456_p5 = scmp.ne.s32.totalorder %s19_s23, %s455_s24  ;;  %p461_p7 = scmp.lt.s32.totalorder %s455_s24, %s455_s24 }
  0x13   :  { %p462_p8 = por %p461_p7, %p460_p6 }
  0x15   :  { %p463_p9 = pnand %p462_p8, %p456_p5 }
  0x17   :  { %466 = shalt.err (!%p463_p9)
}
  0x18   :  { %s517_s25 = smov 128   ;;  %s518_s26 = smov 8  }
  0x19   :  { %24 = dma.hbm_to_vmem [thread:$0]  %s596_s0, 256, %s19_s23, [#allocation5], %s517_s25, %s517_s25, %s518_s26  }
  0x1a   :  { %s519_s29 = smov [#allocation9]  }
  0x1b   :  { %s43_s30 = sshll.u32 %s519_s29, 4  ;;  %s44_s30 = int_to_ptr.vmem [resolvable:$true] %s43_s30 }
  0x1c   :  { %s475_s1 = scalar_lea.vmem %s44_s30, 64  ;;  %p480_p11 = scmp.lt.s32.totalorder %s44_s30, %s44_s30 }
  0x1d   :  { %p476_p10 = scmp.ne.s32.totalorder %s44_s30, %s475_s1  ;;  %p481_p12 = scmp.lt.s32.totalorder %s475_s1, %s475_s1 }
  0x1f   :  { %p482_p13 = por %p481_p12, %p480_p11 }
  0x21   :  { %p483_p0 = pnand %p482_p13, %p476_p10 }
  0x23   :  { %486 = shalt.err (!%p483_p0)
}
  0x24   :  { %46 = dma.hbm_to_vmem [thread:$0]  %s598_s2, 64, %s44_s30, [#allocation8]  }
  0x25   :  { %507 = dma.done.wait [#allocation5], 256  }
  0x26   :  { %508 = vsyncadd [#allocation5], 4294967040 }
  0x27   :  { %509 = dma.done.wait [#allocation8], 2112  }
  0x28   :  { %510 = vsyncadd [#allocation8], 4294965184  ;;  %v520_v0 = vmov 0.0   ;;  %v80_v1 = vld [vmem:[#allocation7 + $0x68] sm:$0xff]  ;;  %v82_v2 = vld [vmem:[#allocation7 + $0x78] sm:$0xff]  ;;  %vm105_vm0 = vcmask 261120   ;;  %v85_v20 = vlaneseq }
  0x29   :  { %176 = vmatprep.mubr.f32.mxu0 %v520_v0  ;;  %253 = vmatprep.mubr.f32.mxu1 %v520_v0  ;;  %v79_v3 = vld [vmem:[#allocation7 + $0x60] sm:$0xff]  ;;  %v81_v4 = vld [vmem:[#allocation7 + $0x70] sm:$0xff]  ;;  %v76_v5 = vld [vmem:[#allocation7 + $0x48] sm:$0xff]  ;;  %vm60_vm1 = vcmask 7168   ;;  %v521_v19 = vmov -inf   ;;  %v522_v53 = vmov 0  }
  0x2a   :  { %136 = vmatprep.subr.mxu0 %v80_v1  ;;  %213 = vmatprep.subr.mxu1 %v82_v2  ;;  %v78_v6 = vld [vmem:[#allocation7 + $0x58] sm:$0xff]  ;;  %v75_v7 = vld [vmem:[#allocation7 + $0x40] sm:$0xff]  ;;  %v77_v8 = vld [vmem:[#allocation7 + $0x50] sm:$0xff]  ;;  %61 = vst.msk [vmem:[#allocation2] sm:$0xff] %vm60_vm1, %v521_v19  ;;  %v86_v21 = vshrl.u32 %v85_v20, 7  ;;  %s523_s0 = smov [#allocation10]  }
  0x2b   :  { %137 = vmatpush1.msra.mxu0 %v79_v3  ;;  %214 = vmatpush1.msra.mxu1 %v81_v4  ;;  %v72_v9 = vld [vmem:[#allocation7 + $0x28] sm:$0xff]  ;;  %v74_v10 = vld [vmem:[#allocation7 + $0x38] sm:$0xff]  ;;  %v71_v11 = vld [vmem:[#allocation7 + $0x20] sm:$0xff]  ;;  %62 = vst.msk [vmem:[#allocation2 + $0x8] sm:$0xff] %vm60_vm1, %v521_v19  ;;  %s369_s2 = sshll.u32 %s523_s0, 4  ;;  %s370_s2 = int_to_ptr.vmem [resolvable:$true] %s369_s2 }
  0x2c   :  { %138 = vmatprep.subr.mxu0 %v76_v5  ;;  %215 = vmatprep.subr.mxu1 %v78_v6  ;;  %v73_v12 = vld [vmem:[#allocation7 + $0x30] sm:$0xff]  ;;  %v68_v13 = vld [vmem:[#allocation7 + $0x8] sm:$0xff]  ;;  %v70_v14 = vld [vmem:[#allocation7 + $0x18] sm:$0xff]  ;;  %63 = vst.msk [vmem:[#allocation3] sm:$0xff] %vm60_vm1, %v520_v0  ;;  %v87_v22 = vsub.s32 0, %v86_v21  ;;  %v95_v23 = vsub.s32 2, %v86_v21  ;;  %p492_p2 = scmp.lt.s32.totalorder %s370_s2, %s370_s2 }
  0x2d   :  { %139 = vmatpush1.msra.mxu0 %v75_v7  ;;  %216 = vmatpush1.msra.mxu1 %v77_v8  ;;  %v67_v15 = vld [vmem:[#allocation7] sm:$0xff]  ;;  %v69_v16 = vld [vmem:[#allocation7 + $0x10] sm:$0xff]  ;;  %v66_v18 = vld [vmem:[#allocation4 + $0x8] sm:$0xff]  ;;  %64 = vst.msk [vmem:[#allocation3 + $0x8] sm:$0xff] %vm60_vm1, %v520_v0  ;;  %v91_v25 = vsub.s32 1, %v86_v21  ;;  %v99_v26 = vsub.s32 3, %v86_v21 }
  0x2e   :  { %140 = vmatprep.subr.mxu0 %v72_v9  ;;  %217 = vmatprep.subr.mxu1 %v74_v10  ;;  %v65_v17 = vld [vmem:[#allocation4] sm:$0xff]  ;;  %v83_v24 = vld [vmem:[#allocation9] sm:$0xf]  ;;  %s487_s7 = scalar_lea.vmem %s370_s2, 1024 }
  0x2f   :  { %141 = vmatpush1.msra.mxu0 %v71_v11  ;;  %218 = vmatpush1.msra.mxu1 %v73_v12  ;;  %v88_v27 = vrot.slane %v83_v24, %v87_v22  ;;  %v96_v28 = vrot.slane %v83_v24, %v95_v23  ;;  %v92_v29 = vrot.slane %v83_v24, %v91_v25  ;;  %p488_p1 = scmp.ne.s32.totalorder %s370_s2, %s487_s7  ;;  %p493_p3 = scmp.lt.s32.totalorder %s487_s7, %s487_s7 }
  0x30   :  { %142 = vmatprep.subr.mxu0 %v68_v13  ;;  %219 = vmatprep.subr.mxu1 %v70_v14  ;;  %v100_v30 = vrot.slane %v83_v24, %v99_v26 }
  0x31   :  { %143 = vmatpush1.msra.mxu0 %v67_v15  ;;  %220 = vmatpush1.msra.mxu1 %v69_v16  ;;  %v565_v54 = vld [vmem:[#allocation2] sm:$0xff]  ;;  %p494_p4 = por %p493_p3, %p492_p2 }
  0x32   :  { %386 = vmatmul.mubr.msk.f32.vlgmr.msra.gmra.mxu0 %vm105_vm0, %v65_v17  ;;  %388 = vmatmul.mubr.msk.f32.vlgmr.msra.gmra.mxu1 %vm105_vm0, %v65_v17  ;;  %v570_v57 = vld [vmem:[#allocation2 + $0x8] sm:$0xff] }
  0x33   :  { %182 = vmatprep.mubr.f32.mxu0 %v520_v0  ;;  %259 = vmatprep.mubr.f32.mxu1 %v520_v0  ;;  %p495_p5 = pnand %p494_p4, %p488_p1 }
  0x34   :  { %401 = vset.pattern.permute.xlu1 %v522_v53  ;;  %402 = vset.pattern.permute.xlu0 %v522_v53 }
  0x36   :  { %387 = vmatmul.mubr.msk.f32.gmra.mxu0 %vm105_vm0, %v66_v18  ;;  %389 = vmatmul.mubr.msk.f32.gmra.mxu1 %vm105_vm0, %v66_v18 }
  0xf2   :  { %v178_v31 = vpop.f32.mrf.mxu0  ;;  %v255_v32 = vpop.f32.mrf.mxu1 }
  0xf3   :  { %v179_v33 = vadd.f32 %v178_v31, %v88_v27  ;;  %v256_v34 = vadd.f32 %v255_v32, %v96_v28 }
  0xf4   :  { %v180_v35 = vpop.f32.mrf.mxu0  ;;  %v257_v36 = vpop.f32.mrf.mxu1 }
  0xf5   :  { %266 = vst [vmem:[#allocation10] sm:$0xff] %v179_v33  ;;  %268 = vst [vmem:[#allocation10 + $0x10] sm:$0xff] %v256_v34  ;;  %v181_v37 = vadd.f32 %v180_v35, %v92_v29  ;;  %v258_v38 = vadd.f32 %v257_v36, %v100_v30  ;;  %v276_v43 = vmax.f32 %v179_v33, %v256_v34 }
  0xf6   :  { %v184_v39 = vpop.f32.mrf.mxu0  ;;  %v261_v40 = vpop.f32.mrf.mxu1 }
  0xf7   :  { %267 = vst [vmem:[#allocation10 + $0x8] sm:$0xff] %v181_v37  ;;  %269 = vst [vmem:[#allocation10 + $0x18] sm:$0xff] %v258_v38  ;;  %v185_v41 = vadd.f32 %v184_v39, %v88_v27  ;;  %v262_v42 = vadd.f32 %v261_v40, %v96_v28  ;;  %v277_v44 = vmax.f32 %v181_v37, %v258_v38 }
  0xf8   :  { %v186_v45 = vpop.f32.mrf.mxu0  ;;  %v263_v46 = vpop.f32.mrf.mxu1 }
  0xf9   :  { %270 = vst [vmem:[#allocation10 + $0x20] sm:$0xff] %v185_v41  ;;  %272 = vst [vmem:[#allocation10 + $0x30] sm:$0xff] %v262_v42  ;;  %v187_v47 = vadd.f32 %v186_v45, %v92_v29  ;;  %v264_v48 = vadd.f32 %v263_v46, %v100_v30  ;;  %v278_v49 = vmax.f32 %v276_v43, %v277_v44 }
  0xfa   :  { %v281_v50 = vmax.f32 %v185_v41, %v262_v42 }
  0xfb   :  { %271 = vst [vmem:[#allocation10 + $0x28] sm:$0xff] %v187_v47  ;;  %273 = vst [vmem:[#allocation10 + $0x38] sm:$0xff] %v264_v48  ;;  %279 = vmax.xlane.f32.xlu0 %v278_v49  ;;  %v282_v51 = vmax.f32 %v187_v47, %v264_v48 }
  0xfd   :  { %v283_v52 = vmax.f32 %v281_v50, %v282_v51 }
  0xff   :  { %284 = vmax.xlane.f32.xlu0 %v283_v52 }
 0x184   :  { %v280_v55 = vpop.xlane.xlu0 %279 }
 0x185   :  { %v568_v56 = vmax.f32 %v565_v54, %v280_v55 }
 0x187   :  { %v290_v58 = vsub.f32 %v565_v54, %v568_v56  ;;  %347 = vst.msk [vmem:[#allocation2] sm:$0xff] %vm60_vm1, %v568_v56  ;;  %300 = vperm.xlu1 %401, %v568_v56  }
 0x188   :  { %v285_v59 = vpop.xlane.xlu0 %284 }
 0x189   :  { %v287_v60 = vmax.f32 %v570_v57, %v285_v59 }
 0x18b   :  { %v291_v61 = vsub.f32 %v570_v57, %v287_v60  ;;  %348 = vst.msk [vmem:[#allocation2 + $0x8] sm:$0xff] %vm60_vm1, %v287_v60  ;;  %305 = vperm.xlu1 %401, %v287_v60  }
 0x202   :  { %v301_v62 = vpop.permute.xlu1 %300 }
 0x203   :  { %v308_v63 = vsub.f32 %v179_v33, %v301_v62  ;;  %v309_v0 = vsub.f32 %v181_v37, %v301_v62  ;;  %v310_v1 = vsub.f32 %v256_v34, %v301_v62  ;;  %v311_v2 = vsub.f32 %v258_v38, %v301_v62 }
 0x205   :  { %v316_v3 = vmul.f32 1.442695, %v308_v63  ;;  %v318_v4 = vmul.f32 1.442695, %v309_v0  ;;  %v320_v5 = vmul.f32 1.442695, %v310_v1 }
 0x206   :  { %v322_v6 = vmul.f32 1.442695, %v311_v2  ;;  %v306_v7 = vpop.permute.xlu1 %305 }
 0x207   :  { %403 = vpow2.f32 %v316_v3  ;;  %v312_v8 = vsub.f32 %v185_v41, %v306_v7  ;;  %v313_v9 = vsub.f32 %v187_v47, %v306_v7  ;;  %v314_v10 = vsub.f32 %v262_v42, %v306_v7 }
 0x208   :  { %405 = vpow2.f32 %v318_v4  ;;  %v315_v11 = vsub.f32 %v264_v48, %v306_v7 }
 0x209   :  { %407 = vpow2.f32 %v320_v5  ;;  %v324_v12 = vmul.f32 1.442695, %v312_v8  ;;  %v326_v13 = vmul.f32 1.442695, %v313_v9  ;;  %v328_v14 = vmul.f32 1.442695, %v314_v10 }
 0x20a   :  { %409 = vpow2.f32 %v322_v6  ;;  %v330_v15 = vmul.f32 1.442695, %v315_v11 }
 0x20b   :  { %411 = vpow2.f32 %v324_v12 }
 0x20c   :  { %413 = vpow2.f32 %v326_v13 }
 0x20d   :  { %415 = vpow2.f32 %v328_v14 }
 0x20e   :  { %417 = vpow2.f32 %v330_v15 }
 0x214   :  { %v404_v16 = vpop.eup %403 }
 0x215   :  { %v406_v17 = vpop.eup %405 }
 0x216   :  { %v408_v18 = vpop.eup %407  ;;  %v332_v19 = vadd.f32 %v406_v17, %v404_v16 }
 0x217   :  { %v410_v20 = vpop.eup %409 }
 0x218   :  { %v412_v21 = vpop.eup %411  ;;  %v333_v22 = vadd.f32 %v408_v18, %v332_v19 }
 0x219   :  { %v414_v23 = vpop.eup %413 }
 0x21a   :  { %v334_v24 = vadd.f32 %v410_v20, %v333_v22  ;;  %v337_v25 = vadd.f32 %v414_v23, %v412_v21  ;;  %v416_v26 = vpop.eup %415 }
 0x21b   :  { %v418_v28 = vpop.eup %417 }
 0x21c   :  { %335 = vadd.xlane.f32.xlu0 %v334_v24  ;;  %v338_v27 = vadd.f32 %v416_v26, %v337_v25 }
 0x21e   :  { %v339_v29 = vadd.f32 %v418_v28, %v338_v27 }
 0x220   :  { %340 = vadd.xlane.f32.xlu1 %v339_v29 }
 0x221   :  { %498 = shalt.err (!%p495_p5)
}
 0x222   :  { %375 = dma.vmem_to_hbm [thread:$0]  %s370_s2, 1024, %s599_s3, [#allocation6], %s514_s18, %s514_s18, %s515_s19   ;;  %v292_v30 = vmul.f32 1.442695, %v290_v58  ;;  %v294_v31 = vmul.f32 1.442695, %v291_v61 }
 0x223   :  { %v288_v33 = vld [vmem:[#allocation3] sm:$0xff]  ;;  %v289_v37 = vld [vmem:[#allocation3 + $0x8] sm:$0xff]  ;;  %v352_v46 = vld [vmem:[#allocation2] sm:$0xff] }
 0x224   :  { %419 = vpow2.f32 %v292_v30  ;;  %v353_v50 = vld [vmem:[#allocation2 + $0x8] sm:$0xff] }
 0x225   :  { %421 = vpow2.f32 %v294_v31 }
 0x231   :  { %v420_v32 = vpop.eup %419 }
 0x232   :  { %v296_v34 = vmul.f32 %v420_v32, %v288_v33  ;;  %v422_v35 = vpop.eup %421 }
 0x233   :  { %v297_v39 = vmul.f32 %v422_v35, %v289_v37 }
 0x2a5   :  { %v336_v36 = vpop.xlane.xlu0 %335 }
 0x2a6   :  { %v342_v38 = vadd.f32 %v336_v36, %v296_v34 }
 0x2a8   :  { %345 = vst.msk [vmem:[#allocation3] sm:$0xff] %vm60_vm1, %v342_v38 }
 0x2a9   :  { %v341_v40 = vpop.xlane.xlu1 %340 }
 0x2aa   :  { %v343_v41 = vadd.f32 %v341_v40, %v297_v39 }
 0x2ac   :  { %346 = vst.msk [vmem:[#allocation3 + $0x8] sm:$0xff] %vm60_vm1, %v343_v41 }
 0x2af   :  { %v354_v42 = vld [vmem:[#allocation3] sm:$0xff] }
 0x2b0   :  { %423 = vlog2.f32 %v354_v42 }
 0x2b3   :  { %v355_v43 = vld [vmem:[#allocation3 + $0x8] sm:$0xff] }
 0x2b4   :  { %425 = vlog2.f32 %v355_v43 }
 0x2bd   :  { %v424_v44 = vpop.eup %423 }
 0x2be   :  { %v357_v45 = vmul.f32 0.6931472, %v424_v44 }
 0x2c0   :  { %v360_v47 = vadd.f32 %v357_v45, %v352_v46 }
 0x2c1   :  { %v426_v48 = vpop.eup %425 }
 0x2c2   :  { %362 = vst.msk [vmem:[%s600_s4] sm:$0xff] %vm60_vm1, %v360_v47  ;;  %v359_v49 = vmul.f32 0.6931472, %v426_v48 }
 0x2c4   :  { %v361_v51 = vadd.f32 %v359_v49, %v353_v50 }
 0x2c6   :  { %363 = vst.msk [vmem:[%s600_s4 + $0x8] sm:$0xff] %vm60_vm1, %v361_v51 }
 0x2c7   :  { %511 = dma.done.wait [#allocation6], 1024  }
 0x2c8   :  { %512 = vsyncadd [#allocation6], 4294966272 }
 0x2c9   :  { %383 = vsyncpa [#allocation5], 1 }
 0x2ca   :  { %384 = vsyncpa [#allocation8], 1 }
 0x2cb   :  { %385 = vsyncpa [#allocation6], 1 }

</bundles_post_ra>
